<compile_context>
chip_gen: v6e
topology: v6e:2x2x1
jax: 0.10.0
libtpu: 0.0.40
codegen_flags: <defaults>
</compile_context>

<pallas_src>
import functools

import jax
import jax.numpy as jnp
from jax import lax
from jax.experimental import pallas as pl
from jax.experimental.pallas import tpu as pltpu


def _lane_tree_reduce(x, op):
    """Pairwise-combine the lane axis of x (width = 128 * 2**k) down to 128.

    Lane-aligned static slices + elementwise op: pure VPU work with log-depth
    dependency chain, keeps the XLU out of the hot loop."""
    w = x.shape[-1]
    while w > 128:
        half = w // 2
        x = op(x[..., :half], x[..., half:])
        w = half
    return x


def _pool_stream_kernel(x_ref, avg_ref, max_ref, sum_acc, max_acc, *,
                        hw, t_hw, needs_mask):
    """Streaming global avg/max pool.  grid = (B, num_k); x block (1, C, t_hw).

    sum_acc / max_acc: (C, 128) f32 lane-parallel running accumulators."""
    k = pl.program_id(1)
    last = pl.num_programs(1) - 1

    @pl.when(k == 0)
    def _init():
        sum_acc[...] = jnp.zeros(sum_acc.shape, sum_acc.dtype)
        max_acc[...] = jnp.full(max_acc.shape, -jnp.inf, max_acc.dtype)

    x = x_ref[0].astype(jnp.float32)                      # (C, t_hw)

    def _accumulate(x_sum, x_max):
        sum_acc[...] = sum_acc[...] + _lane_tree_reduce(x_sum, jnp.add)
        max_acc[...] = jnp.maximum(max_acc[...],
                                   _lane_tree_reduce(x_max, jnp.maximum))

    if needs_mask:
        # Only the very last HW step has out-of-bounds lanes (no wrapper pad);
        # interior steps stay at 2 VPU ops/element.
        @pl.when(k == last)
        def _masked():
            col = lax.broadcasted_iota(jnp.int32, (1, t_hw), 1) + k * t_hw
            valid = col < hw
            _accumulate(jnp.where(valid, x, 0.0),
                        jnp.where(valid, x, -jnp.inf))

        @pl.when(k != last)
        def _unmasked():
            _accumulate(x, x)
    else:
        _accumulate(x, x)

    @pl.when(k == last)
    def _finalize():
        s = jnp.sum(sum_acc[...], axis=-1, keepdims=True) * (1.0 / hw)  # (C, 1)
        m = jnp.max(max_acc[...], axis=-1, keepdims=True)               # (C, 1)
        avg_ref[...] = s[None].astype(avg_ref.dtype)                    # (1, C, 1)
        max_ref[...] = m[None].astype(max_ref.dtype)


def _pool_block_kernel(x_ref, avg_ref, max_ref, *, hw):
    """Whole-row global avg/max pool.  x block (Bb, C, HW) — full spatial extent."""
    x = x_ref[...].astype(jnp.float32)                                  # (Bb, C, HW)
    avg_ref[...] = (jnp.sum(x, axis=-1, keepdims=True) * (1.0 / hw)
                    ).astype(avg_ref.dtype)                             # (Bb, C, 1)
    max_ref[...] = jnp.max(x, axis=-1, keepdims=True).astype(max_ref.dtype)


def channel_attention(x, w_fc1, w_fc2, *, target_tile_bytes=4 << 20):
    """x: (B, C, H, W).  w_fc1: (inter, C, 1, 1).  w_fc2: (C, inter, 1, 1).

    Returns the sigmoid channel-attention gate (B, C, 1, 1), matching the
    PyTorch forward (the module returns the gate; it does not multiply x).
    bf16 input accepted; pooling always accumulates in f32."""
    B, C, H, W = x.shape
    HW = H * W
    x_flat = x.reshape(B, C, HW)
    itemsize = jnp.dtype(x.dtype).itemsize
    row_bytes = C * HW * itemsize

    # Raise the scoped VMEM limit only if bigger-than-default tiles are requested
    # (2x double-buffered tiles must fit v5e's 16 MiB scoped default otherwise).
    vmem_limit = None
    if 2 * target_tile_bytes + (2 << 20) > (16 << 20):
        vmem_limit = int(2 * target_tile_bytes + (4 << 20))

    cost = pl.CostEstimate(
        flops=2 * B * C * HW,            # one add + one max per element
        transcendentals=0,
        bytes_accessed=B * C * HW * itemsize + 2 * B * C * 4,
    )
    out_shapes = (jax.ShapeDtypeStruct((B, C, 1), jnp.float32),
                  jax.ShapeDtypeStruct((B, C, 1), jnp.float32))

    if row_bytes <= target_tile_bytes:
        # Whole spatial extent fits one block: fold batch rows so per-step DMA is
        # large enough to amortize grid-step overhead.
        cap = max(1, target_tile_bytes // max(1, row_bytes))
        bb = 1
        for d in range(1, B + 1):
            if B % d == 0 and d <= cap:
                bb = d
        avg_p, max_p = pl.pallas_call(
            functools.partial(_pool_block_kernel, hw=HW),
            out_shape=out_shapes,
            grid_spec=pltpu.PrefetchScalarGridSpec(
                num_scalar_prefetch=0,
                grid=(B // bb,),
                in_specs=[pl.BlockSpec((bb, C, HW), lambda b: (b, 0, 0))],
                out_specs=[pl.BlockSpec((bb, C, 1), lambda b: (b, 0, 0)),
                           pl.BlockSpec((bb, C, 1), lambda b: (b, 0, 0))],
            ),
            compiler_params=pltpu.CompilerParams(
                dimension_semantics=("parallel",),
                vmem_limit_bytes=vmem_limit),
            cost_estimate=cost,
        )(x_flat)
    else:
        # Streaming path: size the HW tile purely by bytes (multiple of 128 lanes,
        # power-of-two chunk count for the tree reduce).  No wrapper padding.
        cap_lanes = max(128, target_tile_bytes // max(1, C * itemsize))
        n_chunks = 1
        while n_chunks * 2 * 128 <= cap_lanes:
            n_chunks *= 2
        t_hw = 128 * n_chunks
        num_k = pl.cdiv(HW, t_hw)
        needs_mask = (HW % t_hw) != 0
        # NOTE(v7x): with B == 1 only one of the two TensorCores is used; splitting
        # the HW axis across cores (leading grid axis of size 2 + tiny combine)
        # would recover full-chip bandwidth.  B >= 2 already shards via "parallel".
        avg_p, max_p = pl.pallas_call(
            functools.partial(_pool_stream_kernel, hw=HW, t_hw=t_hw,
                              needs_mask=needs_mask),
            out_shape=out_shapes,
            grid_spec=pltpu.PrefetchScalarGridSpec(
                num_scalar_prefetch=0,
                grid=(B, num_k),
                in_specs=[pl.BlockSpec((1, C, t_hw), lambda b, k: (b, 0, k))],
                out_specs=[pl.BlockSpec((1, C, 1), lambda b, k: (b, 0, 0)),
                           pl.BlockSpec((1, C, 1), lambda b, k: (b, 0, 0))],
                scratch_shapes=[
                    pltpu.VMEM((C, 128), jnp.float32),   # lane-parallel running sum
                    pltpu.VMEM((C, 128), jnp.float32),   # lane-parallel running max
                ],
            ),
            compiler_params=pltpu.CompilerParams(
                dimension_semantics=("parallel", "arbitrary"),
                vmem_limit_bytes=vmem_limit),
            cost_estimate=cost,
        )(x_flat)

    # fc1 -> ReLU -> fc2 -> sigmoid epilogue (bias-free 1x1 convs == matmuls),
    # batched over 2B rows in plain XLA: trivially cheap, better MXU fill than
    # per-batch (2, C) matmuls inside the kernel.
    avg = avg_p[:, :, 0]                                   # (B, C) f32
    mx = max_p[:, :, 0]                                    # (B, C) f32
    w1 = w_fc1[:, :, 0, 0].astype(jnp.float32)             # (inter, C)
    w2 = w_fc2[:, :, 0, 0].astype(jnp.float32)             # (C, inter)
    h = jnp.maximum(jnp.concatenate([avg, mx], axis=0) @ w1.T, 0.0)   # (2B, inter)
    out = (h[:B] + h[B:]) @ w2.T                                       # (B, C)
    return jax.nn.sigmoid(out).astype(x.dtype).reshape(B, C, 1, 1)


def channel_attention_ref(x, w_fc1, w_fc2):
    """Pure-JAX reference mirroring the PyTorch forward."""
    B, C, H, W = x.shape
    xf = x.astype(jnp.float32)
    avg = jnp.mean(xf, axis=(2, 3))                  # (B, C)
    mx = jnp.max(xf, axis=(2, 3))                    # (B, C)
    w1 = w_fc1[:, :, 0, 0].astype(jnp.float32)       # (inter, C)
    w2 = w_fc2[:, :, 0, 0].astype(jnp.float32)       # (C, inter)

    def mlp(v):
        h = jnp.maximum(v @ w1.T, 0.0)
        return h @ w2.T

    out = mlp(avg) + mlp(mx)
    return jax.nn.sigmoid(out).reshape(B, C, 1, 1).astype(x.dtype)


if __name__ == "__main__":
    key = jax.random.PRNGKey(0)
    ratio = 4

    # Case 1: module config in_planes=16, ratio=4 -> inter=4; whole-row path.
    # Case 2: ragged spatial dims (HW=63); whole-row path, no padding anywhere.
    # Case 3: small byte target forces the streaming path with a masked ragged
    #         tail (HW=5184, t_hw=1024, 6 HW steps) on small test data.
    cases = [
        ((2, 16, 16, 16), None),
        ((2, 16, 9, 7), None),
        ((2, 16, 72, 72), 64 * 1024),
    ]
    for (B, C, H, W), ttb in cases:
        inter = max(1, C // ratio)
        key, kx, k1, k2 = jax.random.split(key, 4)
        x = jax.random.normal(kx, (B, C, H, W), dtype=jnp.float32)
        w_fc1 = jax.random.normal(k1, (inter, C, 1, 1), dtype=jnp.float32) * 0.2
        w_fc2 = jax.random.normal(k2, (C, inter, 1, 1), dtype=jnp.float32) * 0.2

        kwargs = {} if ttb is None else {"target_tile_bytes": ttb}
        out = jax.block_until_ready(channel_attention(x, w_fc1, w_fc2, **kwargs))
        ref = channel_attention_ref(x, w_fc1, w_fc2)

        assert out.shape == (B, C, 1, 1), f"bad shape {out.shape}"
        assert jnp.allclose(out, ref, atol=1e-5, rtol=1e-5), \
            f"mismatch vs reference for shape {(B, C, H, W)}"

    print("KERNEL_OK")
</pallas_src>

<mosaic_0001>
module attributes {stable_mosaic.version = 11 : i64} {
  func.func @_pool_block_kernel(%arg0: i32, %arg1: memref<2x16x256xf32, #tpu.memory_space<vmem>>, %arg2: memref<2x16x1xf32, #tpu.memory_space<vmem>>, %arg3: memref<2x16x1xf32, #tpu.memory_space<vmem>>) attributes {dimension_semantics = [#tpu.dimension_semantics<parallel>], iteration_bounds = array<i64: 1>, scalar_prefetch = 0 : i64, scratch_operands = 0 : i64, tpu.core_type = #tpu.core_type<tc>, window_params = [{transform_indices = @transform_0, window_bounds = array<i64: 2, 16, 256>}, {transform_indices = @transform_1, window_bounds = array<i64: 2, 16, 1>}, {transform_indices = @transform_2, window_bounds = array<i64: 2, 16, 1>}]} {
    %c0 = arith.constant 0 : index
    %c0_0 = arith.constant 0 : index
    %c0_1 = arith.constant 0 : index
    %0 = vector.load %arg1[%c0, %c0_0, %c0_1] : memref<2x16x256xf32, #tpu.memory_space<vmem>>, vector<2x16x256xf32>
    %cst = arith.constant dense<0.000000e+00> : vector<2x16xf32>
    %1 = vector.multi_reduction <add>, %0, %cst [2] : vector<2x16x256xf32> to vector<2x16xf32>
    %2 = vector.shape_cast %1 : vector<2x16xf32> to vector<2x16x1xf32>
    %cst_2 = arith.constant 3.906250e-03 : f32
    %3 = vector.broadcast %cst_2 : f32 to vector<2x16x1xf32>
    %4 = arith.mulf %2, %3 : vector<2x16x1xf32>
    %c0_3 = arith.constant 0 : index
    %c0_4 = arith.constant 0 : index
    %c0_5 = arith.constant 0 : index
    %5 = vector.load %arg2[%c0_3, %c0_4, %c0_5] : memref<2x16x1xf32, #tpu.memory_space<vmem>>, vector<2x16x1xf32>
    tpu.vector_store %arg2[%c0_3, %c0_4, %c0_5], %4 {strides = array<i32>} : memref<2x16x1xf32, #tpu.memory_space<vmem>>, vector<2x16x1xf32>,
    %cst_6 = arith.constant dense<0xFF800000> : vector<2x16xf32>
    %6 = vector.multi_reduction <maximumf>, %0, %cst_6 [2] : vector<2x16x256xf32> to vector<2x16xf32>
    %7 = vector.shape_cast %6 : vector<2x16xf32> to vector<2x16x1xf32>
    %c0_7 = arith.constant 0 : index
    %c0_8 = arith.constant 0 : index
    %c0_9 = arith.constant 0 : index
    %8 = vector.load %arg3[%c0_7, %c0_8, %c0_9] : memref<2x16x1xf32, #tpu.memory_space<vmem>>, vector<2x16x1xf32>
    tpu.vector_store %arg3[%c0_7, %c0_8, %c0_9], %7 {strides = array<i32>} : memref<2x16x1xf32, #tpu.memory_space<vmem>>, vector<2x16x1xf32>,
    return
  }
  func.func @transform_0(%arg0: i32) -> (i32, i32, i32) {
    %c0_i32 = arith.constant 0 : i32
    %c0_i32_0 = arith.constant 0 : i32
    %c0_i32_1 = arith.constant 0 : i32
    return %arg0, %c0_i32, %c0_i32_0 : i32, i32, i32
  }
  func.func @transform_1(%arg0: i32) -> (i32, i32, i32) {
    %c0_i32 = arith.constant 0 : i32
    %c0_i32_0 = arith.constant 0 : i32
    %c0_i32_1 = arith.constant 0 : i32
    return %arg0, %c0_i32, %c0_i32_0 : i32, i32, i32
  }
  func.func @transform_2(%arg0: i32) -> (i32, i32, i32) {
    %c0_i32 = arith.constant 0 : i32
    %c0_i32_0 = arith.constant 0 : i32
    %c0_i32_1 = arith.constant 0 : i32
    return %arg0, %c0_i32, %c0_i32_0 : i32, i32, i32
  }
}

</mosaic_0001>

<bundles_post_ra>
// kernel: tpu_custom_call.1
= control target key start
LH: loop header
LB: loop body
LE: loop exit
PB: predicated region body
PF: predicated region fallthrough
CT: control target
= control target key end

     0   :  { %8 = vsyncpa [#allocation3], 0  ;;  %s103_s9 = smov [#allocation2]   ;;  %s156_s0 = inlined_call_operand.hbm [shape: f32[2,16,256], index: 0, kind: input, shape index: {}]   ;;  %s157_s1 = inlined_call_operand.vmem [shape: f32[2,16,1], index: 1, kind: output, shape index: {0}]   ;;  %s158_s2 = inlined_call_operand.vmem [shape: f32[2,16,1], index: 2, kind: output, shape index: {1}]  }
   0x1   :  { %s14_s10 = sshll.u32 %s103_s9, 4  ;;  %s15_s10 = int_to_ptr.vmem [resolvable:$true] %s14_s10 }
   0x2   :  { %s89_s11 = scalar_lea.vmem %s15_s10, 1024  ;;  %p94_p1 = scmp.lt.s32.totalorder %s15_s10, %s15_s10 }
   0x3   :  { %p90_p0 = scmp.ne.s32.totalorder %s15_s10, %s89_s11  ;;  %p95_p2 = scmp.lt.s32.totalorder %s89_s11, %s89_s11 }
   0x5   :  { %p96_p3 = por %p95_p2, %p94_p1 }
   0x7   :  { %p97_p4 = pnand %p96_p3, %p90_p0 }
   0x9   :  { %100 = shalt.err (!%p97_p4)
}
   0xa   :  { %s104_s12 = smov 256   ;;  %s105_s13 = smov 16  }
   0xb   :  { %20 = dma.hbm_to_vmem [thread:$0]  %s156_s0, 1024, %s15_s10, [#allocation3], %s104_s12, %s104_s12, %s105_s13  }
   0xc   :  { %101 = dma.done.wait [#allocation3], 1024  }
   0xd   :  { %102 = vsyncadd [#allocation3], 4294966272  ;;  %v28_v0 = vld [vmem:[#allocation2 + $0x20] sm:$0xff]  ;;  %v29_v1 = vld [vmem:[#allocation2 + $0x28] sm:$0xff]  ;;  %vm48_vm0 = vcmask 7168  }
   0xe   :  { %v24_v2 = vld [vmem:[#allocation2] sm:$0xff]  ;;  %v38_v3 = vadd.f32 %v29_v1, %v28_v0  ;;  %v25_v4 = vld [vmem:[#allocation2 + $0x8] sm:$0xff]  ;;  %v30_v5 = vld [vmem:[#allocation2 + $0x30] sm:$0xff]  ;;  %v59_v15 = vmax.f32 %v28_v0, %v29_v1 }
   0xf   :  { %v31_v6 = vld [vmem:[#allocation2 + $0x38] sm:$0xff]  ;;  %v32_v7 = vadd.f32 %v25_v4, %v24_v2  ;;  %v26_v8 = vld [vmem:[#allocation2 + $0x10] sm:$0xff]  ;;  %v53_v13 = vmax.f32 %v24_v2, %v25_v4 }
  0x10   :  { %v27_v9 = vld [vmem:[#allocation2 + $0x18] sm:$0xff]  ;;  %39 = vadd.xlane.f32.xlu1 %v38_v3  ;;  %v41_v10 = vadd.f32 %v31_v6, %v30_v5  ;;  %v62_v14 = vmax.f32 %v30_v5, %v31_v6 }
  0x11   :  { %33 = vadd.xlane.f32.xlu0 %v32_v7  ;;  %v35_v11 = vadd.f32 %v27_v9, %v26_v8  ;;  %v56_v12 = vmax.f32 %v26_v8, %v27_v9 }
  0x14   :  { %42 = vadd.xlane.f32.xlu1 %v41_v10 }
  0x15   :  { %36 = vadd.xlane.f32.xlu0 %v35_v11 }
  0x18   :  { %57 = vmax.xlane.f32.xlu1 %v56_v12 }
  0x19   :  { %54 = vmax.xlane.f32.xlu0 %v53_v13 }
  0x1c   :  { %63 = vmax.xlane.f32.xlu1 %v62_v14 }
  0x1d   :  { %60 = vmax.xlane.f32.xlu0 %v59_v15 }
  0x99   :  { %v40_v16 = vpop.xlane.xlu1 %39 }
  0x9a   :  { %v46_v17 = vmul.f32 0.00390625, %v40_v16  ;;  %v34_v18 = vpop.xlane.xlu0 %33 }
  0x9b   :  { %v44_v19 = vmul.f32 0.00390625, %v34_v18 }
  0x9c   :  { %51 = vst.msk [vmem:[%s157_s1 + $0x10] sm:$0xff] %vm48_vm0, %v46_v17 }
  0x9d   :  { %49 = vst.msk [vmem:[%s157_s1] sm:$0xff] %vm48_vm0, %v44_v19  ;;  %v43_v20 = vpop.xlane.xlu1 %42 }
  0x9e   :  { %v47_v21 = vmul.f32 0.00390625, %v43_v20  ;;  %v37_v22 = vpop.xlane.xlu0 %36 }
  0x9f   :  { %v45_v23 = vmul.f32 0.00390625, %v37_v22 }
  0xa0   :  { %52 = vst.msk [vmem:[%s157_s1 + $0x18] sm:$0xff] %vm48_vm0, %v47_v21 }
  0xa1   :  { %50 = vst.msk [vmem:[%s157_s1 + $0x8] sm:$0xff] %vm48_vm0, %v45_v23  ;;  %v58_v24 = vpop.xlane.xlu1 %57 }
  0xa2   :  { %66 = vst.msk [vmem:[%s158_s2 + $0x8] sm:$0xff] %vm48_vm0, %v58_v24  ;;  %v55_v25 = vpop.xlane.xlu0 %54 }
  0xa3   :  { %65 = vst.msk [vmem:[%s158_s2] sm:$0xff] %vm48_vm0, %v55_v25 }
  0xa5   :  { %v64_v26 = vpop.xlane.xlu1 %63 }
  0xa6   :  { %68 = vst.msk [vmem:[%s158_s2 + $0x18] sm:$0xff] %vm48_vm0, %v64_v26  ;;  %v61_v27 = vpop.xlane.xlu0 %60 }
  0xa7   :  { %67 = vst.msk [vmem:[%s158_s2 + $0x10] sm:$0xff] %vm48_vm0, %v61_v27 }
  0xa8   :  { %77 = vsyncpa [#allocation3], 1 }

</bundles_post_ra>
